<compile_context>
chip_gen: v7x
topology: tpu7x:2x2x1
jax: 0.10.0
libtpu: 0.0.40
codegen_flags: <defaults>
</compile_context>

<pallas_src>
import functools

import jax
import jax.numpy as jnp
from jax.experimental import pallas as pl
from jax.experimental.pallas import tpu as pltpu

LOG_STD_MIN = -20.0
LOG_STD_MAX = 2.0


def _round_up(x, m):
    return ((x + m - 1) // m) * m


def gaussian_policy_kernel(obs_ref, w1_ref, b1_ref, w2_ref, b2_ref,
                           wh_ref, bh_ref, out_ref, *, act_dim):
    """One batch tile: obs [TB, obs_dim] (bf16) -> out [TB, 2*act_dim] = (mean | clamped log_std)."""
    bf16 = jnp.bfloat16

    # shared_net: Linear(obs_dim, H1) -> ReLU -> Linear(H1, H2)
    h1 = jnp.dot(obs_ref[...], w1_ref[...], preferred_element_type=jnp.float32)
    h1 = jnp.maximum(h1 + b1_ref[...], 0.0)                           # f32 epilogue

    feats = jnp.dot(h1.astype(bf16), w2_ref[...], preferred_element_type=jnp.float32)
    feats = feats + b2_ref[...]

    # fused heads: single lane-dense (128-wide) MXU matmul for [mean | log_std | zero pad]
    heads = jnp.dot(feats.astype(bf16), wh_ref[...], preferred_element_type=jnp.float32)
    heads = heads + bh_ref[...]

    # clamp the log_std columns. Pad columns are exactly zero (zero weights + zero bias),
    # so a simple col >= act_dim mask is correct; (1, 128) iota broadcasts over rows.
    col = jax.lax.broadcasted_iota(jnp.int32, (1, heads.shape[-1]), dimension=1)
    heads = jnp.where(col >= act_dim,
                      jnp.clip(heads, LOG_STD_MIN, LOG_STD_MAX),
                      heads)

    # store only the real (mean | log_std) columns -> 16x less HBM writeback than the slab.
    out_cols = out_ref.shape[-1]
    out_ref[...] = heads[:, :out_cols].astype(out_ref.dtype)


def prepare_params(params):
    """One-time device-side preprocessing: fuse the two heads, pad to 128 lanes, cast to bf16.

    Call once and reuse the returned dict every step so weights stay pinned on device and
    the per-call path is just pad(obs) + pallas_call.
    """
    act_dim = params["wm"].shape[1]
    out_cols = 2 * act_dim
    out_pad = max(128, _round_up(out_cols, 128))

    wh = jnp.concatenate([params["wm"], params["ws"]], axis=1)        # (H2, 2A)
    bh = jnp.concatenate([params["bm"], params["bs"]], axis=1)        # (1, 2A)
    if out_pad > out_cols:
        wh = jnp.pad(wh, ((0, 0), (0, out_pad - out_cols)))
        bh = jnp.pad(bh, ((0, 0), (0, out_pad - out_cols)))

    prepared = dict(
        w1=params["w1"].astype(jnp.bfloat16),
        b1=params["b1"],
        w2=params["w2"].astype(jnp.bfloat16),
        b2=params["b2"],
        wh=wh.astype(jnp.bfloat16),
        bh=bh,
        act_dim=act_dim,                      # static Python int
    )
    jax.block_until_ready([v for k, v in prepared.items() if k != "act_dim"])
    return prepared


def gaussian_policy_forward(obs, prepared, *, batch_tile=1024):
    """Returns (mean, log_std), each of shape [B, act_dim], float32."""
    B, obs_dim = obs.shape
    act_dim = prepared["act_dim"]
    out_cols = 2 * act_dim

    w1, b1 = prepared["w1"], prepared["b1"]
    w2, b2 = prepared["w2"], prepared["b2"]
    wh, bh = prepared["wh"], prepared["bh"]
    H1, H2 = w1.shape[1], w2.shape[1]
    out_pad = wh.shape[1]

    # --- batch tiling ---------------------------------------------------------------
    # Pad only to a sublane multiple; pick tb as a near-divisor so padding waste is at
    # most 8*(num_tiles-1) rows. Force >= 2 tiles when B >= 16 so both v7x TCs get work.
    padded_b8 = _round_up(B, 8)
    num_tiles = pl.cdiv(padded_b8, batch_tile)
    if B >= 16:
        num_tiles = max(num_tiles, 2)
    tb = _round_up(pl.cdiv(padded_b8, num_tiles), 8)
    padded_b = tb * num_tiles

    obs_p = obs.astype(jnp.bfloat16)          # halves obs DMA; fuses with pad under jit
    if padded_b != B:
        obs_p = jnp.pad(obs_p, ((0, padded_b - B), (0, 0)))

    kernel = functools.partial(gaussian_policy_kernel, act_dim=act_dim)

    fused = pl.pallas_call(
        kernel,
        out_shape=jax.ShapeDtypeStruct((padded_b, out_cols), jnp.float32),
        grid_spec=pltpu.PrefetchScalarGridSpec(
            num_scalar_prefetch=0,
            grid=(num_tiles,),
            in_specs=[
                pl.BlockSpec((tb, obs_dim), lambda i: (i, 0)),
                # weights/biases: constant block index -> VMEM-resident across grid steps
                pl.BlockSpec((obs_dim, H1), lambda i: (0, 0)),
                pl.BlockSpec((1, H1), lambda i: (0, 0)),
                pl.BlockSpec((H1, H2), lambda i: (0, 0)),
                pl.BlockSpec((1, H2), lambda i: (0, 0)),
                pl.BlockSpec((H2, out_pad), lambda i: (0, 0)),
                pl.BlockSpec((1, out_pad), lambda i: (0, 0)),
            ],
            out_specs=pl.BlockSpec((tb, out_cols), lambda i: (i, 0)),
        ),
        compiler_params=pltpu.CompilerParams(
            dimension_semantics=("parallel",),   # batch tiles split across TCs (v7x megacore)
        ),
    )(obs_p, w1, b1, w2, b2, wh, bh)

    narrow = fused[:B]                         # single cheap slice of the narrow output
    return narrow[:, :act_dim], narrow[:, act_dim:]


def init_params(key, obs_dim, act_dim, hidden_dims=(256, 256)):
    """Deterministic synthetic parameters (PyTorch-Linear-like uniform init), f32 master copy."""
    h1, h2 = hidden_dims
    ks = jax.random.split(key, 8)

    def lin(kw, kb, fan_in, fan_out):
        bound = 1.0 / jnp.sqrt(fan_in)
        w = jax.random.uniform(kw, (fan_in, fan_out), jnp.float32, -bound, bound)
        b = jax.random.uniform(kb, (1, fan_out), jnp.float32, -bound, bound)
        return w, b

    w1, b1 = lin(ks[0], ks[1], obs_dim, h1)
    w2, b2 = lin(ks[2], ks[3], h1, h2)
    wm, bm = lin(ks[4], ks[5], h2, act_dim)
    ws, bs = lin(ks[6], ks[7], h2, act_dim)
    return dict(w1=w1, b1=b1, w2=w2, b2=b2, wm=wm, bm=bm, ws=ws, bs=bs)


def reference_forward_f32(obs, p):
    h1 = jnp.maximum(obs @ p["w1"] + p["b1"], 0.0)
    feats = h1 @ p["w2"] + p["b2"]
    mean = feats @ p["wm"] + p["bm"]
    log_std = jnp.clip(feats @ p["ws"] + p["bs"], LOG_STD_MIN, LOG_STD_MAX)
    return mean, log_std


def reference_forward_bf16(obs, p):
    """JAX reference with the SAME operand casting as the kernel (bf16 matmul, f32 accumulate)."""
    bf = jnp.bfloat16

    def mm(x, w):
        return jnp.dot(x.astype(bf), w.astype(bf), preferred_element_type=jnp.float32)

    h1 = jnp.maximum(mm(obs, p["w1"]) + p["b1"], 0.0)
    feats = mm(h1, p["w2"]) + p["b2"]
    mean = mm(feats, p["wm"]) + p["bm"]
    log_std = jnp.clip(mm(feats, p["ws"]) + p["bs"], LOG_STD_MIN, LOG_STD_MAX)
    return mean, log_std


if __name__ == "__main__":
    B, OBS_DIM, ACT_DIM = 2, 16, 4
    HIDDEN = (256, 256)

    key = jax.random.PRNGKey(0)
    k_obs, k_par = jax.random.split(key)
    obs = jax.random.normal(k_obs, (B, OBS_DIM), jnp.float32)
    params = init_params(k_par, OBS_DIM, ACT_DIM, HIDDEN)

    prepared = prepare_params(params)          # one-time: fuse heads, pad, cast bf16

    mean, log_std = gaussian_policy_forward(obs, prepared)
    jax.block_until_ready((mean, log_std))

    assert mean.shape == (B, ACT_DIM) and log_std.shape == (B, ACT_DIM)

    # Tight check vs a JAX reference using identical bf16-operand / f32-accumulate math.
    ref_mean_bf, ref_log_std_bf = reference_forward_bf16(obs, params)
    assert jnp.allclose(mean, ref_mean_bf, atol=1e-3, rtol=1e-3)
    assert jnp.allclose(log_std, ref_log_std_bf, atol=1e-3, rtol=1e-3)

    # Loose sanity check vs the full-f32 reference (bf16 operand rounding only).
    ref_mean, ref_log_std = reference_forward_f32(obs, params)
    assert jnp.allclose(mean, ref_mean, atol=5e-2, rtol=5e-2)
    assert jnp.allclose(log_std, ref_log_std, atol=5e-2, rtol=5e-2)

    # Also exercise a larger, non-multiple-of-tile batch (multi-tile / parallel path).
    B2 = 600
    obs2 = jax.random.normal(jax.random.PRNGKey(1), (B2, OBS_DIM), jnp.float32)
    mean2, log_std2 = gaussian_policy_forward(obs2, prepared)
    jax.block_until_ready((mean2, log_std2))
    ref_mean2, ref_log_std2 = reference_forward_bf16(obs2, params)
    assert mean2.shape == (B2, ACT_DIM) and log_std2.shape == (B2, ACT_DIM)
    assert jnp.allclose(mean2, ref_mean2, atol=1e-3, rtol=1e-3)
    assert jnp.allclose(log_std2, ref_log_std2, atol=1e-3, rtol=1e-3)

    print("KERNEL_OK")
</pallas_src>

<mosaic_0001>
module attributes {stable_mosaic.version = 11 : i64} {
  func.func @gaussian_policy_kernel(%arg0: i32, %arg1: memref<8x16xbf16, #tpu.memory_space<vmem>>, %arg2: memref<16x256xbf16, #tpu.memory_space<vmem>>, %arg3: memref<1x256xf32, #tpu.memory_space<vmem>>, %arg4: memref<256x256xbf16, #tpu.memory_space<vmem>>, %arg5: memref<1x256xf32, #tpu.memory_space<vmem>>, %arg6: memref<256x128xbf16, #tpu.memory_space<vmem>>, %arg7: memref<1x128xf32, #tpu.memory_space<vmem>>, %arg8: memref<8x8xf32, #tpu.memory_space<vmem>>) attributes {dimension_semantics = [#tpu.dimension_semantics<parallel>], iteration_bounds = array<i64: 1>, scalar_prefetch = 0 : i64, scratch_operands = 0 : i64, tpu.core_type = #tpu.core_type<tc>, window_params = [{transform_indices = @transform_0, window_bounds = array<i64: 8, 16>}, {pipeline_mode = #tpu.pipeline_mode<synchronous>, transform_indices = @transform_1, window_bounds = array<i64: 16, 256>}, {pipeline_mode = #tpu.pipeline_mode<synchronous>, transform_indices = @transform_2, window_bounds = array<i64: 1, 256>}, {pipeline_mode = #tpu.pipeline_mode<synchronous>, transform_indices = @transform_3, window_bounds = array<i64: 256, 256>}, {pipeline_mode = #tpu.pipeline_mode<synchronous>, transform_indices = @transform_4, window_bounds = array<i64: 1, 256>}, {pipeline_mode = #tpu.pipeline_mode<synchronous>, transform_indices = @transform_5, window_bounds = array<i64: 256, 128>}, {pipeline_mode = #tpu.pipeline_mode<synchronous>, transform_indices = @transform_6, window_bounds = array<i64: 1, 128>}, {transform_indices = @transform_7, window_bounds = array<i64: 8, 8>}]} {
    %c0 = arith.constant 0 : index
    %c0_0 = arith.constant 0 : index
    %0 = vector.load %arg1[%c0, %c0_0] : memref<8x16xbf16, #tpu.memory_space<vmem>>, vector<8x16xbf16>
    %c0_1 = arith.constant 0 : index
    %c0_2 = arith.constant 0 : index
    %1 = vector.load %arg2[%c0_1, %c0_2] : memref<16x256xbf16, #tpu.memory_space<vmem>>, vector<16x256xbf16>
    %cst = arith.constant dense<0.000000e+00> : vector<8x256xf32>
    %2 = tpu.matmul %0, %1, %cst {dimension_numbers = #tpu.dot_dimension_numbers<[1], [0], [0], [1], [0, 0, 1, 1], [], []>} : vector<8x16xbf16>, vector<16x256xbf16>, vector<8x256xf32> -> vector<8x256xf32>
    %c0_3 = arith.constant 0 : index
    %c0_4 = arith.constant 0 : index
    %3 = vector.load %arg3[%c0_3, %c0_4] : memref<1x256xf32, #tpu.memory_space<vmem>>, vector<1x256xf32>
    %4 = vector.broadcast %3 : vector<1x256xf32> to vector<8x256xf32>
    %5 = arith.addf %2, %4 : vector<8x256xf32>
    %cst_5 = arith.constant 0.000000e+00 : f32
    %6 = vector.broadcast %cst_5 : f32 to vector<8x256xf32>
    %7 = arith.maximumf %5, %6 : vector<8x256xf32>
    %8 = arith.truncf %7 : vector<8x256xf32> to vector<8x256xbf16>
    %c0_6 = arith.constant 0 : index
    %c0_7 = arith.constant 0 : index
    %9 = vector.load %arg4[%c0_6, %c0_7] : memref<256x256xbf16, #tpu.memory_space<vmem>>, vector<256x256xbf16>
    %cst_8 = arith.constant dense<0.000000e+00> : vector<8x256xf32>
    %10 = tpu.matmul %8, %9, %cst_8 {dimension_numbers = #tpu.dot_dimension_numbers<[1], [0], [0], [1], [0, 0, 1, 1], [], []>} : vector<8x256xbf16>, vector<256x256xbf16>, vector<8x256xf32> -> vector<8x256xf32>
    %c0_9 = arith.constant 0 : index
    %c0_10 = arith.constant 0 : index
    %11 = vector.load %arg5[%c0_9, %c0_10] : memref<1x256xf32, #tpu.memory_space<vmem>>, vector<1x256xf32>
    %12 = vector.broadcast %11 : vector<1x256xf32> to vector<8x256xf32>
    %13 = arith.addf %10, %12 : vector<8x256xf32>
    %14 = arith.truncf %13 : vector<8x256xf32> to vector<8x256xbf16>
    %c0_11 = arith.constant 0 : index
    %c0_12 = arith.constant 0 : index
    %15 = vector.load %arg6[%c0_11, %c0_12] : memref<256x128xbf16, #tpu.memory_space<vmem>>, vector<256x128xbf16>
    %cst_13 = arith.constant dense<0.000000e+00> : vector<8x128xf32>
    %16 = tpu.matmul %14, %15, %cst_13 {dimension_numbers = #tpu.dot_dimension_numbers<[1], [0], [0], [1], [0, 0, 1, 1], [], []>} : vector<8x256xbf16>, vector<256x128xbf16>, vector<8x128xf32> -> vector<8x128xf32>
    %c0_14 = arith.constant 0 : index
    %c0_15 = arith.constant 0 : index
    %17 = vector.load %arg7[%c0_14, %c0_15] : memref<1x128xf32, #tpu.memory_space<vmem>>, vector<1x128xf32>
    %18 = vector.broadcast %17 : vector<1x128xf32> to vector<8x128xf32>
    %19 = arith.addf %16, %18 : vector<8x128xf32>
    %20 = tpu.iota {dimensions = array<i32: 1>} : vector<1x128xi32>
    %c4_i32 = arith.constant 4 : i32
    %21 = vector.broadcast %c4_i32 : i32 to vector<1x128xi32>
    %22 = arith.cmpi sge, %20, %21 : vector<1x128xi32>
    %cst_16 = arith.constant -2.000000e+01 : f32
    %cst_17 = arith.constant 2.000000e+00 : f32
    %23 = vector.broadcast %cst_16 : f32 to vector<8x128xf32>
    %24 = arith.maximumf %23, %19 : vector<8x128xf32>
    %25 = vector.broadcast %cst_17 : f32 to vector<8x128xf32>
    %26 = arith.minimumf %25, %24 : vector<8x128xf32>
    %27 = vector.shape_cast %22 : vector<1x128xi1> to vector<1x128xi1>
    %28 = vector.broadcast %27 : vector<1x128xi1> to vector<8x128xi1>
    %29 = arith.select %28, %26, %19 : vector<8x128xi1>, vector<8x128xf32>
    %30 = vector.extract_strided_slice %29 {offsets = [0, 0], sizes = [8, 8], strides = [1, 1]} : vector<8x128xf32> to vector<8x8xf32>
    %c0_18 = arith.constant 0 : index
    %c0_19 = arith.constant 0 : index
    %31 = vector.load %arg8[%c0_18, %c0_19] : memref<8x8xf32, #tpu.memory_space<vmem>>, vector<8x8xf32>
    tpu.vector_store %arg8[%c0_18, %c0_19], %30 {strides = array<i32>} : memref<8x8xf32, #tpu.memory_space<vmem>>, vector<8x8xf32>,
    return
  }
  func.func @transform_0(%arg0: i32) -> (i32, i32) {
    %c0_i32 = arith.constant 0 : i32
    %c0_i32_0 = arith.constant 0 : i32
    return %arg0, %c0_i32 : i32, i32
  }
  func.func @transform_1(%arg0: i32) -> (i32, i32) {
    %c0_i32 = arith.constant 0 : i32
    %c0_i32_0 = arith.constant 0 : i32
    %c0_i32_1 = arith.constant 0 : i32
    return %c0_i32, %c0_i32_0 : i32, i32
  }
  func.func @transform_2(%arg0: i32) -> (i32, i32) {
    %c0_i32 = arith.constant 0 : i32
    %c0_i32_0 = arith.constant 0 : i32
    %c0_i32_1 = arith.constant 0 : i32
    return %c0_i32, %c0_i32_0 : i32, i32
  }
  func.func @transform_3(%arg0: i32) -> (i32, i32) {
    %c0_i32 = arith.constant 0 : i32
    %c0_i32_0 = arith.constant 0 : i32
    %c0_i32_1 = arith.constant 0 : i32
    return %c0_i32, %c0_i32_0 : i32, i32
  }
  func.func @transform_4(%arg0: i32) -> (i32, i32) {
    %c0_i32 = arith.constant 0 : i32
    %c0_i32_0 = arith.constant 0 : i32
    %c0_i32_1 = arith.constant 0 : i32
    return %c0_i32, %c0_i32_0 : i32, i32
  }
  func.func @transform_5(%arg0: i32) -> (i32, i32) {
    %c0_i32 = arith.constant 0 : i32
    %c0_i32_0 = arith.constant 0 : i32
    %c0_i32_1 = arith.constant 0 : i32
    return %c0_i32, %c0_i32_0 : i32, i32
  }
  func.func @transform_6(%arg0: i32) -> (i32, i32) {
    %c0_i32 = arith.constant 0 : i32
    %c0_i32_0 = arith.constant 0 : i32
    %c0_i32_1 = arith.constant 0 : i32
    return %c0_i32, %c0_i32_0 : i32, i32
  }
  func.func @transform_7(%arg0: i32) -> (i32, i32) {
    %c0_i32 = arith.constant 0 : i32
    %c0_i32_0 = arith.constant 0 : i32
    return %arg0, %c0_i32 : i32, i32
  }
}

</mosaic_0001>

<bundles_post_ra>
// kernel: tpu_custom_call.1
= control target key start
LH: loop header
LB: loop body
LE: loop exit
PB: predicated region body
PF: predicated region fallthrough
CT: control target
= control target key end

     0   :  { %12 = vsyncpa [#allocation3], 0  ;;  %s998_s0 = inlined_call_operand.hbm [shape: bf16[8,16], index: 0, kind: input, shape index: {}]   ;;  %s999_s1 = inlined_call_operand.hbm [shape: bf16[16,256], index: 1, kind: input, shape index: {}]   ;;  %s1000_s2 = inlined_call_operand.vmem [shape: f32[1,256], index: 2, kind: input, shape index: {}]   ;;  %s1001_s3 = inlined_call_operand.hbm [shape: bf16[256,256], index: 3, kind: input, shape index: {}]   ;;  %s1002_s4 = inlined_call_operand.vmem [shape: f32[1,256], index: 4, kind: input, shape index: {}]   ;;  %s1003_s5 = inlined_call_operand.hbm [shape: bf16[256,128], index: 5, kind: input, shape index: {}]   ;;  %s1004_s6 = inlined_call_operand.vmem [shape: f32[1,128], index: 6, kind: input, shape index: {}]   ;;  %s1005_s7 = inlined_call_operand.hbm [shape: f32[8,8], index: 7, kind: output, shape index: {}]  }
   0x1   :  { %13 = vsyncpa [#allocation6], 0 }
   0x2   :  { %14 = vsyncpa [#allocation9], 0 }
   0x3   :  { %15 = vsyncpa [#allocation4], 0  ;;  %s873_s24 = smov [#allocation5]   ;;  %s755_s28 = scalar_lea.hbm %s999_s1, 256 }
   0x4   :  { %s31_s25 = sshll.u32 %s873_s24, 4  ;;  %p756_p0 = scmp.ne.s32.totalorder %s999_s1, %s755_s28  ;;  %s32_s25 = int_to_ptr.vmem [resolvable:$true] %s31_s25 }
   0x5   :  { %p759_p1 = scmp.lt.u32.totalorder %s755_s28, %s999_s1 }
   0x7   :  { %p761_p2 = pnand %p759_p1, %p756_p0 }
   0x9   :  { %764 = shalt.err (!%p761_p2)
}
   0xa   :  { %s765_s10 = scalar_lea.vmem %s32_s25, 256  ;;  %p770_p4 = scmp.lt.s32.totalorder %s32_s25, %s32_s25 }
   0xb   :  { %p766_p3 = scmp.ne.s32.totalorder %s32_s25, %s765_s10  ;;  %p771_p5 = scmp.lt.s32.totalorder %s765_s10, %s765_s10 }
   0xd   :  { %p772_p6 = por %p771_p5, %p770_p4 }
   0xf   :  { %p773_p7 = pnand %p772_p6, %p766_p3 }
  0x11   :  { %776 = shalt.err (!%p773_p7)
}
  0x12   :  { %s874_s11 = smov 128   ;;  %s875_s12 = smov 8  }
  0x13   :  { %37 = dma.hbm_to_vmem [thread:$0]  %s999_s1, 256, %s32_s25, [#allocation6], %s874_s11, %s874_s11, %s875_s12  }
  0x14   :  { %s876_s15 = smov [#allocation2]   ;;  %s877_s17 = smov [#allocation7]  }
  0x15   :  { %s22_s16 = sshll.u32 %s876_s15, 4  ;;  %s45_s18 = sshll.u32 %s877_s17, 4  ;;  %s23_s16 = int_to_ptr.vmem [resolvable:$true] %s22_s16  ;;  %s46_s18 = int_to_ptr.vmem [resolvable:$true] %s45_s18 }
  0x16   :  { %s777_s21 = scalar_lea.hbm %s998_s0, 64 }
  0x17   :  { %p778_p8 = scmp.ne.s32.totalorder %s998_s0, %s777_s21  ;;  %p781_p9 = scmp.lt.u32.totalorder %s777_s21, %s998_s0 }
  0x19   :  { %p783_p10 = pnand %p781_p9, %p778_p8 }
  0x1b   :  { %786 = shalt.err (!%p783_p10)
}
  0x1c   :  { %s787_s1 = scalar_lea.vmem %s23_s16, 64  ;;  %p792_p12 = scmp.lt.s32.totalorder %s23_s16, %s23_s16 }
  0x1d   :  { %p788_p11 = scmp.ne.s32.totalorder %s23_s16, %s787_s1  ;;  %p793_p13 = scmp.lt.s32.totalorder %s787_s1, %s787_s1 }
  0x1f   :  { %p794_p0 = por %p793_p13, %p792_p12 }
  0x21   :  { %p795_p1 = pnand %p794_p0, %p788_p11 }
  0x23   :  { %798 = shalt.err (!%p795_p1)
}
  0x24   :  { %25 = dma.hbm_to_vmem [thread:$0]  %s998_s0, 64, %s23_s16, [#allocation3]  }
  0x25   :  { %s799_s30 = scalar_lea.hbm %s1001_s3, 4096 }
  0x26   :  { %p800_p2 = scmp.ne.s32.totalorder %s1001_s3, %s799_s30  ;;  %p803_p3 = scmp.lt.u32.totalorder %s799_s30, %s1001_s3 }
  0x28   :  { %p805_p4 = pnand %p803_p3, %p800_p2 }
  0x2a   :  { %808 = shalt.err (!%p805_p4)
}
  0x2b   :  { %s809_s14 = scalar_lea.vmem %s46_s18, 4096  ;;  %p814_p6 = scmp.lt.s32.totalorder %s46_s18, %s46_s18 }
  0x2c   :  { %p810_p5 = scmp.ne.s32.totalorder %s46_s18, %s809_s14  ;;  %p815_p7 = scmp.lt.s32.totalorder %s809_s14, %s809_s14 }
  0x2e   :  { %p816_p8 = por %p815_p7, %p814_p6 }
  0x30   :  { %p817_p9 = pnand %p816_p8, %p810_p5 }
  0x32   :  { %820 = shalt.err (!%p817_p9)
}
  0x33   :  { %51 = dma.hbm_to_vmem [thread:$0]  %s1001_s3, 4096, %s46_s18, [#allocation6], %s874_s11, %s874_s11, %s875_s12  }
  0x34   :  { %s878_s16 = smov [#allocation8]   ;;  %s821_s21 = scalar_lea.hbm %s1003_s5, 2048 }
  0x35   :  { %s59_s17 = sshll.u32 %s878_s16, 4  ;;  %p822_p10 = scmp.ne.s32.totalorder %s1003_s5, %s821_s21  ;;  %s60_s17 = int_to_ptr.vmem [resolvable:$true] %s59_s17 }
  0x36   :  { %p825_p11 = scmp.lt.u32.totalorder %s821_s21, %s1003_s5 }
  0x38   :  { %p827_p12 = pnand %p825_p11, %p822_p10 }
  0x3a   :  { %830 = shalt.err (!%p827_p12)
}
  0x3b   :  { %s831_s1 = scalar_lea.vmem %s60_s17, 2048  ;;  %p836_p0 = scmp.lt.s32.totalorder %s60_s17, %s60_s17 }
  0x3c   :  { %p832_p13 = scmp.ne.s32.totalorder %s60_s17, %s831_s1  ;;  %p837_p1 = scmp.lt.s32.totalorder %s831_s1, %s831_s1 }
  0x3e   :  { %p838_p2 = por %p837_p1, %p836_p0 }
  0x40   :  { %p839_p3 = pnand %p838_p2, %p832_p13 }
  0x42   :  { %842 = shalt.err (!%p839_p3)
}
  0x43   :  { %s879_s3 = smov 64   ;;  %s880_s11 = smov 4  }
  0x44   :  { %65 = dma.hbm_to_vmem [thread:$0]  %s1003_s5, 2048, %s60_s17, [#allocation9], %s879_s3, %s879_s3, %s880_s11  }
  0x45   :  { %865 = dma.done.wait [#allocation3], 64  }
  0x46   :  { %866 = vsyncadd [#allocation3], 4294967232 }
  0x47   :  { %867 = dma.done.wait [#allocation6], 4352  }
  0x48   :  { %868 = vsyncadd [#allocation6], 4294962944 }
  0x49   :  { %869 = dma.done.wait [#allocation9], 2048  }
  0x4a   :  { %870 = vsyncadd [#allocation9], 4294965248  ;;  %v881_v0 = vmov 0   ;;  %v688_v1 = vld [vmem:[#allocation5 + $0x4] ss:$8 sps:$4 sm:$0xff]   ;;  %vm106_vm0 = vcmask 130048   ;;  %v86_v49 = vlaneseq }
  0x4b   :  { %142 = vmatprep.mubr.bf16.mxu0 %v881_v0  ;;  %v690_v2 = vld [vmem:[#allocation5] ss:$8 sps:$4 sm:$0xff]   ;;  %v81_v3 = vld [vmem:[#allocation2] sm:$0xf]  ;;  %110 = vmatprep.subr.bf16.mxu0 %v688_v1  ;;  %v693_v5 = vld [vmem:[#allocation7] ss:$8 sps:$4 sm:$0xff]  }
  0x4c   :  { %v691_v4 = vld [vmem:[#allocation7 + $0x4] ss:$8 sps:$4 sm:$0xff]   ;;  %111 = vmatpush1.bf16.msra.mxu0 %v690_v2  ;;  %v694_v6 = vld [vmem:[#allocation7 + $0x14] ss:$8 sps:$4 sm:$0xff]   ;;  %v696_v7 = vld [vmem:[#allocation7 + $0x10] ss:$8 sps:$4 sm:$0xff]  }
  0x4d   :  { %359 = vmatprep.subr.bf16.mxu1 %v691_v4  ;;  %v697_v8 = vld [vmem:[#allocation7 + $0x24] ss:$8 sps:$4 sm:$0xff]   ;;  %v699_v9 = vld [vmem:[#allocation7 + $0x20] ss:$8 sps:$4 sm:$0xff]   ;;  %v700_v10 = vld [vmem:[#allocation7 + $0x34] ss:$8 sps:$4 sm:$0xff]  }
  0x4e   :  { %360 = vmatpush1.bf16.msra.mxu1 %v693_v5  ;;  %v702_v11 = vld [vmem:[#allocation7 + $0x30] ss:$8 sps:$4 sm:$0xff]   ;;  %v703_v12 = vld [vmem:[#allocation7 + $0x44] ss:$8 sps:$4 sm:$0xff]   ;;  %v705_v13 = vld [vmem:[#allocation7 + $0x40] ss:$8 sps:$4 sm:$0xff]  }
  0x4f   :  { %606 = vmatmul.mubr.msk.bf16.vlgmr.msra.gmra.mrb[0].mxu0 %vm106_vm0, %v81_v3  ;;  %361 = vmatprep.subr.bf16.mxu1 %v694_v6  ;;  %v706_v14 = vld [vmem:[#allocation7 + $0x54] ss:$8 sps:$4 sm:$0xff]   ;;  %v708_v15 = vld [vmem:[#allocation7 + $0x50] ss:$8 sps:$4 sm:$0xff]   ;;  %v709_v16 = vld [vmem:[#allocation7 + $0x64] ss:$8 sps:$4 sm:$0xff]  }
  0x50   :  { %v711_v17 = vld [vmem:[#allocation7 + $0x60] ss:$8 sps:$4 sm:$0xff]   ;;  %v712_v18 = vld [vmem:[#allocation7 + $0x74] ss:$8 sps:$4 sm:$0xff]   ;;  %v714_v19 = vld [vmem:[#allocation7 + $0x70] ss:$8 sps:$4 sm:$0xff]  }
  0x51   :  { %v715_v20 = vld [vmem:[#allocation7 + $0x84] ss:$8 sps:$4 sm:$0xff]   ;;  %v717_v21 = vld [vmem:[#allocation7 + $0x80] ss:$8 sps:$4 sm:$0xff]   ;;  %v718_v22 = vld [vmem:[#allocation7 + $0x94] ss:$8 sps:$4 sm:$0xff]  }
  0x52   :  { %362 = vmatpush1.bf16.msra.mxu1 %v696_v7  ;;  %v720_v23 = vld [vmem:[#allocation7 + $0x90] ss:$8 sps:$4 sm:$0xff]   ;;  %v721_v24 = vld [vmem:[#allocation7 + $0xa4] ss:$8 sps:$4 sm:$0xff]   ;;  %v723_v25 = vld [vmem:[#allocation7 + $0xa0] ss:$8 sps:$4 sm:$0xff]  }
  0x53   :  { %363 = vmatprep.subr.bf16.mxu1 %v697_v8  ;;  %v724_v26 = vld [vmem:[#allocation7 + $0xb4] ss:$8 sps:$4 sm:$0xff]   ;;  %v726_v27 = vld [vmem:[#allocation7 + $0xb0] ss:$8 sps:$4 sm:$0xff]   ;;  %v727_v28 = vld [vmem:[#allocation7 + $0xc4] ss:$8 sps:$4 sm:$0xff]  }
  0x54   :  { %v729_v29 = vld [vmem:[#allocation7 + $0xc0] ss:$8 sps:$4 sm:$0xff]   ;;  %v730_v30 = vld [vmem:[#allocation7 + $0xd4] ss:$8 sps:$4 sm:$0xff]   ;;  %v732_v31 = vld [vmem:[#allocation7 + $0xd0] ss:$8 sps:$4 sm:$0xff]  }
  0x55   :  { %v733_v32 = vld [vmem:[#allocation7 + $0xe4] ss:$8 sps:$4 sm:$0xff]   ;;  %v735_v33 = vld [vmem:[#allocation7 + $0xe0] ss:$8 sps:$4 sm:$0xff]   ;;  %v736_v34 = vld [vmem:[#allocation7 + $0xf4] ss:$8 sps:$4 sm:$0xff]  }
  0x56   :  { %364 = vmatpush1.bf16.msra.mxu1 %v699_v9  ;;  %v738_v35 = vld [vmem:[#allocation7 + $0xf0] ss:$8 sps:$4 sm:$0xff]   ;;  %v739_v36 = vld [vmem:[#allocation8 + $0x40] sm:$0xff]   ;;  %v741_v38 = vld [vmem:[#allocation8 + $0x48] sm:$0xff]   ;;  %v87_v50 = vshrl.u32 %v86_v49, 7  ;;  %vm585_vm2 = vcmask 64512  }
  0x57   :  { %365 = vmatprep.subr.bf16.mxu1 %v700_v10  ;;  %v740_v37 = vld [vmem:[#allocation8] sm:$0xff]   ;;  %656 = vmatprep.subr.bf16.mxu0 %v739_v36  ;;  %v742_v39 = vld [vmem:[#allocation8 + $0x8] sm:$0xff]   ;;  %v743_v40 = vld [vmem:[#allocation8 + $0x50] sm:$0xff]  }
  0x58   :  { %657 = vmatpush3.bf16.msra.mxu0 %v740_v37  ;;  %v744_v41 = vld [vmem:[#allocation8 + $0x10] sm:$0xff]   ;;  %v745_v42 = vld [vmem:[#allocation8 + $0x58] sm:$0xff]   ;;  %v747_v44 = vld [vmem:[#allocation8 + $0x60] sm:$0xff]   ;;  %v88_v51 = vsub.s32 0, %v87_v50  ;;  %v92_v53 = vsub.s32 1, %v87_v50 }
  0x59   :  { %658 = vmatprep.subr.bf16.mxu0 %v741_v38  ;;  %v746_v43 = vld [vmem:[#allocation8 + $0x18] sm:$0xff]   ;;  %v748_v45 = vld [vmem:[#allocation8 + $0x20] sm:$0xff]   ;;  %v749_v46 = vld [vmem:[#allocation8 + $0x68] sm:$0xff]  }
  0x5a   :  { %366 = vmatpush1.bf16.msra.mxu1 %v702_v11  ;;  %v750_v47 = vld [vmem:[#allocation8 + $0x28] sm:$0xff]   ;;  %v751_v48 = vld [vmem:[#allocation8 + $0x70] sm:$0xff]   ;;  %v753_v3 = vld [vmem:[#allocation8 + $0x78] sm:$0xff]  }
  0x5b   :  { %367 = vmatprep.subr.bf16.mxu1 %v703_v12  ;;  %v84_v52 = vld [vmem:[%s1000_s2] sm:$0x3]  ;;  %v752_v2 = vld [vmem:[#allocation8 + $0x30] sm:$0xff]   ;;  %v754_v4 = vld [vmem:[#allocation8 + $0x38] sm:$0xff]  }
  0x5c   :  { %659 = vmatpush3.bf16.msra.mxu0 %v742_v39  ;;  %v89_v54 = vrot.slane %v84_v52, %v88_v51  ;;  %v93_v55 = vrot.slane %v84_v52, %v92_v53  ;;  %v187_v5 = vld [vmem:[%s1002_s4] sm:$0x3]  ;;  %s882_s4 = smov [#allocation10]  }
  0x5d   :  { %660 = vmatprep.subr.bf16.mxu0 %v743_v40  ;;  %v192_v6 = vrot.slane %v187_v5, %v88_v51  ;;  %v196_v7 = vrot.slane %v187_v5, %v92_v53  ;;  %s593_s30 = sshll.u32 %s882_s4, 4  ;;  %s594_s30 = int_to_ptr.vmem [resolvable:$true] %s593_s30 }
  0x5e   :  { %368 = vmatpush1.bf16.msra.mxu1 %v705_v13  ;;  %s843_s8 = scalar_lea.vmem %s594_s30, 128  ;;  %p848_p5 = scmp.lt.s32.totalorder %s594_s30, %s594_s30 }
  0x5f   :  { %369 = vmatprep.subr.bf16.mxu1 %v706_v14  ;;  %p844_p4 = scmp.ne.s32.totalorder %s594_s30, %s843_s8  ;;  %p849_p6 = scmp.lt.s32.totalorder %s843_s8, %s843_s8 }
  0x60   :  { %661 = vmatpush3.bf16.msra.mxu0 %v744_v41 }
  0x61   :  { %662 = vmatprep.subr.bf16.mxu0 %v745_v42  ;;  %p850_p7 = por %p849_p6, %p848_p5 }
  0x62   :  { %370 = vmatpush1.bf16.msra.mxu1 %v708_v15 }
  0x63   :  { %371 = vmatprep.subr.bf16.mxu1 %v709_v16  ;;  %p851_p8 = pnand %p850_p7, %p844_p4 }
  0x64   :  { %663 = vmatpush3.bf16.msra.mxu0 %v746_v43 }
  0x65   :  { %664 = vmatprep.subr.bf16.mxu0 %v747_v44 }
  0x66   :  { %372 = vmatpush1.bf16.msra.mxu1 %v711_v17  ;;  %v639_v17 = vld [vmem:[%s1004_s6] ss:$0 sm:$0xff] }
  0x67   :  { %373 = vmatprep.subr.bf16.mxu1 %v712_v18 }
  0x68   :  { %665 = vmatpush3.bf16.msra.mxu0 %v748_v45 }
  0x69   :  { %666 = vmatprep.subr.bf16.mxu0 %v749_v46 }
  0x6a   :  { %374 = vmatpush1.bf16.msra.mxu1 %v714_v19 }
  0x6b   :  { %375 = vmatprep.subr.bf16.mxu1 %v715_v20 }
  0x6c   :  { %667 = vmatpush3.bf16.msra.mxu0 %v750_v47 }
  0x6d   :  { %668 = vmatprep.subr.bf16.mxu0 %v751_v48 }
  0x6e   :  { %376 = vmatpush1.bf16.msra.mxu1 %v717_v21 }
  0x6f   :  { %377 = vmatprep.subr.bf16.mxu1 %v718_v22  ;;  %v578_v22 = vand.u32 127, %v86_v49 }
  0x70   :  { %669 = vmatpush3.bf16.msra.mxu0 %v752_v2 }
  0x71   :  { %670 = vmatprep.subr.bf16.mxu0 %v753_v3  ;;  %vm579_vm1 = vcmp.ge.s32.totalorder %v578_v22, 4 }
  0x72   :  { %378 = vmatpush1.bf16.msra.mxu1 %v720_v23 }
  0x73   :  { %379 = vmatprep.subr.bf16.mxu1 %v721_v24 }
  0x74   :  { %671 = vmatpush3.bf16.msra.mxu0 %v754_v4 }
  0x76   :  { %380 = vmatpush1.bf16.msra.mxu1 %v723_v25 }
  0x77   :  { %381 = vmatprep.subr.bf16.mxu1 %v724_v26 }
  0x7a   :  { %382 = vmatpush1.bf16.msra.mxu1 %v726_v27 }
  0x7b   :  { %383 = vmatprep.subr.bf16.mxu1 %v727_v28 }
  0x7e   :  { %384 = vmatpush1.bf16.msra.mxu1 %v729_v29 }
  0x7f   :  { %385 = vmatprep.subr.bf16.mxu1 %v730_v30 }
  0x82   :  { %386 = vmatpush1.bf16.msra.mxu1 %v732_v31 }
  0x83   :  { %387 = vmatprep.subr.bf16.mxu1 %v733_v32 }
  0x86   :  { %388 = vmatpush1.bf16.msra.mxu1 %v735_v33 }
  0x87   :  { %389 = vmatprep.subr.bf16.mxu1 %v736_v34 }
  0x8a   :  { %390 = vmatpush1.bf16.msra.mxu1 %v738_v35 }
 0x122   :  { %v144_v56 = vpop.f32.mrb[0].mxu0 }
 0x123   :  { %v145_v57 = vadd.f32 %v144_v56, %v89_v54  ;;  %v146_v58 = vpop.f32.mrb[1].mxu0 }
 0x124   :  { %v147_v59 = vadd.f32 %v146_v58, %v93_v55  ;;  %v148_v60 = vpop.f32.mrb[2].mxu0 }
 0x125   :  { %v151_v61 = vmax.f32 %v145_v57, 0.0  ;;  %v149_v62 = vpop.f32.mrb[3].mxu0 }
 0x126   :  { %v152_v63 = vmax.f32 %v147_v59, 0.0 }
 0x127   :  { %v153_v1 = vpack.c.bf16 %v151_v61, %v151_v61 }
 0x128   :  { %v154_v0 = vpack.c.bf16 %v152_v63, %v152_v63 }
 0x12a   :  { %391 = vmatprep.mubr.bf16.mxu1 %v154_v0 }
 0x12b   :  { %392 = vmatmul.mubr.bf16.vlgmr.msra.gmra.mrb[0].mxu1 %v153_v1 }
 0x1fe   :  { %v393_v8 = vpop.f32.mrb[0].mxu1 }
 0x1ff   :  { %v394_v9 = vadd.f32 %v393_v8, %v192_v6  ;;  %v395_v10 = vpop.f32.mrb[1].mxu1 }
 0x200   :  { %v396_v11 = vadd.f32 %v395_v10, %v196_v7  ;;  %v397_v12 = vpop.f32.mrb[2].mxu1 }
 0x201   :  { %v398_v13 = vpop.f32.mrb[3].mxu1  ;;  %v400_v15 = vpack.c.bf16 %v394_v9, %v394_v9 }
 0x202   :  { %v401_v14 = vpack.c.bf16 %v396_v11, %v396_v11 }
 0x204   :  { %569 = vmatprep.mubr.bf16.mxu0 %v401_v14 }
 0x205   :  { %570 = vmatmul.mubr.bf16.vlgmr.msra.gmra.mrb[4].mxu0 %v400_v15 }
 0x2d8   :  { %v672_v16 = vpop.f32.mrb[4].mxu0 }
 0x2d9   :  { %v673_v18 = vpop.f32.mrb[5].mxu0 }
 0x2da   :  { %v674_v19 = vadd.f32 %v673_v18, %v672_v16  ;;  %v675_v20 = vpop.f32.mrb[6].mxu0 }
 0x2db   :  { %v676_v21 = vpop.f32.mrb[7].mxu0 }
 0x2dc   :  { %v572_v23 = vadd.f32 %v674_v19, %v639_v17 }
 0x2de   :  { %v580_v24 = vmax.f32 %v572_v23, -20.0 }
 0x2e0   :  { %v581_v25 = vmin.f32 %v580_v24, 2.0 }
 0x2e2   :  { %v584_v26 = vsel %vm579_vm1, %v581_v25, %v572_v23 }
 0x2e3   :  { %586 = vst.msk [vmem:[#allocation10] sm:$0xff] %vm585_vm2, %v584_v26 }
 0x2e4   :  { %854 = shalt.err (!%p851_p8)
}
 0x2e5   :  { %s855_s10 = scalar_lea.hbm %s1005_s7, 128 }
 0x2e6   :  { %p856_p9 = scmp.ne.s32.totalorder %s1005_s7, %s855_s10  ;;  %p859_p10 = scmp.lt.u32.totalorder %s855_s10, %s1005_s7 }
 0x2e8   :  { %p861_p11 = pnand %p859_p10, %p856_p9 }
 0x2ea   :  { %864 = shalt.err (!%p861_p11)
}
 0x2eb   :  { %596 = dma.vmem_to_hbm [thread:$0]  %s594_s30, 128, %s1005_s7, [#allocation4]  }
 0x2ec   :  { %871 = dma.done.wait [#allocation4], 128  }
 0x2ed   :  { %872 = vsyncadd [#allocation4], 4294967168 }
 0x2ee   :  { %600 = vsyncpa [#allocation3], 1 }
 0x2ef   :  { %601 = vsyncpa [#allocation6], 1 }
 0x2f0   :  { %602 = vsyncpa [#allocation9], 1 }
 0x2f1   :  { %603 = vsyncpa [#allocation4], 1 }

</bundles_post_ra>
